<compile_context>
chip_gen: v6e
topology: v6e:2x2x1
jax: 0.10.0
libtpu: 0.0.40
codegen_flags: <defaults>
</compile_context>

<pallas_src>
import functools
import math

import jax
import jax.numpy as jnp
from jax import lax
from jax.experimental import pallas as pl
from jax.experimental.pallas import tpu as pltpu


# ----------------------------------------------------------------------------
# Device / tiling helpers
# ----------------------------------------------------------------------------
def _vmem_capacity_bytes():
    """Physical VMEM per TensorCore; conservative 64 MiB if the query fails."""
    try:
        cap = int(pltpu.get_tpu_info().vmem_capacity_bytes)
        if cap > 0:
            return cap
    except Exception:
        pass
    return 64 * 1024 * 1024


def _vmem_limit_bytes(cap):
    return min(int(cap * 0.8), 112 * 1024 * 1024)


def _pick_tile(dim, target, granule):
    """Largest tile <= target that divides dim, preferring multiples of granule."""
    if dim <= target:
        return dim
    t = (target // granule) * granule
    while t >= granule:
        if dim % t == 0:
            return t
        t -= granule
    for t in range(target, 0, -1):
        if dim % t == 0:
            return t
    return dim


# ----------------------------------------------------------------------------
# Kernel 1: tiled dense projection  y = x @ w   (bf16 MXU, f32 accumulation)
# ----------------------------------------------------------------------------
def _linear_kernel(x_ref, w_ref, o_ref, acc_ref):
    @pl.when(pl.program_id(2) == 0)
    def _init():
        acc_ref[...] = jnp.zeros_like(acc_ref)

    acc_ref[...] += jnp.dot(
        x_ref[...].astype(jnp.bfloat16),
        w_ref[...].astype(jnp.bfloat16),
        preferred_element_type=jnp.float32,
    )

    @pl.when(pl.program_id(2) == pl.num_programs(2) - 1)
    def _store():
        o_ref[...] = acc_ref[...].astype(o_ref.dtype)


def pallas_linear(x2d, w_t, *, out_dtype=None):
    """x2d: (M, K), w_t: (K, N) -> (M, N). Tiled, K-axis reduction in VMEM."""
    M, K = x2d.shape
    K2, N = w_t.shape
    assert K == K2
    out_dtype = out_dtype if out_dtype is not None else x2d.dtype

    cap = _vmem_capacity_bytes()
    if cap >= 96 * 1024 * 1024:          # v5e / v6e (128 MiB VMEM)
        tm_t, tn_t, tk_t = 512, 512, 1024
    else:                                # v7x (64 MiB VMEM)
        tm_t, tn_t, tk_t = 256, 256, 512
    tm = _pick_tile(M, tm_t, 8)
    tn = _pick_tile(N, tn_t, 128)
    tk = _pick_tile(K, tk_t, 128)
    grid = (M // tm, N // tn, K // tk)

    return pl.pallas_call(
        _linear_kernel,
        out_shape=jax.ShapeDtypeStruct((M, N), out_dtype),
        grid_spec=pltpu.PrefetchScalarGridSpec(
            num_scalar_prefetch=0,
            grid=grid,
            in_specs=[
                pl.BlockSpec((tm, tk), lambda i, j, k: (i, k)),
                pl.BlockSpec((tk, tn), lambda i, j, k: (k, j)),
            ],
            out_specs=pl.BlockSpec((tm, tn), lambda i, j, k: (i, j)),
            scratch_shapes=[pltpu.VMEM((tm, tn), jnp.float32)],
        ),
        compiler_params=pltpu.CompilerParams(
            dimension_semantics=("parallel", "parallel", "arbitrary"),
            vmem_limit_bytes=_vmem_limit_bytes(cap),
        ),
    )(x2d, w_t)


# ----------------------------------------------------------------------------
# Kernel 2: scaled-dot-product attention over one (batch, head-tile, q-tile)
# block.  Inputs/ctx stay in (B, L, model_dim) layout: the head split is done
# by column-blocked BlockSpecs + static in-kernel lane slices, so no HBM
# transposes (shape()/unshape()) are needed.
# ----------------------------------------------------------------------------
def _attention_kernel(q_ref, k_ref, v_ref, ctx_ref, attn_ref, *, th, dph):
    q = q_ref[0].astype(jnp.bfloat16)   # (tq, th*dph); 1/sqrt(dph) folded in
    k = k_ref[0].astype(jnp.bfloat16)   # (Lk, th*dph)
    v = v_ref[0].astype(jnp.bfloat16)   # (Lk, th*dph)

    ctx_cols = []
    for h in range(th):                 # static unroll over the head tile
        lo, hi = h * dph, (h + 1) * dph
        qh = q[:, lo:hi]                # (tq, dph)
        kh = k[:, lo:hi]                # (Lk, dph)
        vh = v[:, lo:hi]                # (Lk, dph)

        # QK^T: contract last dims directly (no transposed copy of K).
        scores = lax.dot_general(
            qh, kh,
            dimension_numbers=(((1,), (1,)), ((), ())),
            preferred_element_type=jnp.float32,
        )                               # (tq, Lk), f32

        # TODO(synk): optional `mask` (masked_fill -1e18) not wired in.
        m = jnp.max(scores, axis=-1, keepdims=True)
        e = jnp.exp(scores - m)
        denom = jnp.sum(e, axis=-1, keepdims=True)
        p = e / denom                   # exact: returned attn rows sum to 1

        attn_ref[0, h] = p.astype(attn_ref.dtype)

        # dropout is identity in eval mode -> drop_attn == attn
        ctx_cols.append(
            jnp.dot(p.astype(jnp.bfloat16), vh,
                    preferred_element_type=jnp.float32)
        )                               # (tq, dph), f32

    # Single lane-dense store of the whole (tq, th*dph) ctx tile.
    ctx_ref[0] = jnp.concatenate(ctx_cols, axis=-1).astype(ctx_ref.dtype)


def _attn_tiles(H, Lq, Lk, dph, budget):
    """Pick (head_tile, q_tile) so the per-step working set fits `budget`."""
    head_opts = [t for t in range(H, 0, -1)
                 if H % t == 0 and (t == H or (t * dph) % 128 == 0)]
    if Lq <= 512:
        q_opts = [Lq] + [t for t in range(Lq - 1, 0, -1)
                         if Lq % t == 0 and t % 8 == 0]
    else:
        q_opts = [t for t in range(512, 0, -1) if Lq % t == 0 and t % 8 == 0]
        if not q_opts:
            q_opts = [t for t in range(512, 0, -1) if Lq % t == 0]

    def est(th, tq):
        cols = th * dph
        pipelined = 2 * (tq * cols * 2          # Q block (bf16, double-buffered)
                         + 2 * Lk * cols * 2    # K, V blocks
                         + th * tq * Lk * 4     # attn out block (f32)
                         + tq * cols * 2)       # ctx out block (bf16)
        live = 4 * tq * Lk * 4 + 2 * tq * cols * 4   # scores/exp/p + ctx concat
        return pipelined + live

    for tq in q_opts:           # prefer big q-tiles (K/V re-read ~ Lq/tq)
        for th in head_opts:    # then big head tiles (fewer grid steps)
            if est(th, tq) <= budget:
                return th, tq
    return head_opts[-1], q_opts[-1]


def pallas_attention(q3, k3, v3, *, head_count, dim_per_head,
                     attn_dtype, ctx_dtype):
    """q3: (B, Lq, Dm), k3/v3: (B, Lk, Dm) projected tensors (bf16).

    Returns (ctx (B, Lq, Dm), attn (B, H, Lq, Lk))."""
    B, Lq, Dm = q3.shape
    Lk = k3.shape[1]
    H, dph = head_count, dim_per_head
    assert Dm == H * dph

    cap = _vmem_capacity_bytes()
    th, tq = _attn_tiles(H, Lq, Lk, dph, budget=int(cap * 0.55))
    nh, nq = H // th, Lq // tq
    cols = th * dph

    kernel = functools.partial(_attention_kernel, th=th, dph=dph)
    ctx, attn = pl.pallas_call(
        kernel,
        grid=(B, nh, nq),
        in_specs=[
            pl.BlockSpec((1, tq, cols), lambda b, hi, qi: (b, qi, hi)),
            pl.BlockSpec((1, Lk, cols), lambda b, hi, qi: (b, 0, hi)),
            pl.BlockSpec((1, Lk, cols), lambda b, hi, qi: (b, 0, hi)),
        ],
        out_specs=[
            pl.BlockSpec((1, tq, cols), lambda b, hi, qi: (b, qi, hi)),
            pl.BlockSpec((1, th, tq, Lk), lambda b, hi, qi: (b, hi, qi, 0)),
        ],
        out_shape=(
            jax.ShapeDtypeStruct((B, Lq, Dm), ctx_dtype),
            jax.ShapeDtypeStruct((B, H, Lq, Lk), attn_dtype),
        ),
        compiler_params=pltpu.CompilerParams(
            dimension_semantics=("parallel", "parallel", "parallel"),
            vmem_limit_bytes=_vmem_limit_bytes(cap),
        ),
    )(q3, k3, v3)
    return ctx, attn


# ----------------------------------------------------------------------------
# Module wrapper (deterministic synthetic weights; no bias, add_qkvbias=False)
# ----------------------------------------------------------------------------
class MultiHeadedAttentionPallas:
    def __init__(self, head_count, model_dim, rng_key):
        assert model_dim % head_count == 0
        self.head_count = head_count
        self.model_dim = model_dim
        self.dim_per_head = model_dim // head_count

        k1, k2, k3, k4 = jax.random.split(rng_key, 4)
        scale = 1.0 / math.sqrt(model_dim)

        # nn.Linear weight is (out, in); store transposed for y = x @ W^T.
        def mk(k):
            w = jax.random.normal(k, (model_dim, model_dim), jnp.float32) * scale
            return w.T  # (in, out)

        # f32 master weights (used by the pure-JAX reference).
        self.wk_t, self.wv_t, self.wq_t, self.wf_t = mk(k1), mk(k2), mk(k3), mk(k4)

        # bf16 kernel weights; 1/sqrt(dim_per_head) folded into the Q weight.
        q_scale = 1.0 / math.sqrt(self.dim_per_head)
        bf = jnp.bfloat16
        self.wq_bf16 = (self.wq_t * q_scale).astype(bf)
        self.wk_bf16 = self.wk_t.astype(bf)
        self.wv_bf16 = self.wv_t.astype(bf)
        self.wf_bf16 = self.wf_t.astype(bf)
        self.w_qkv_bf16 = jnp.concatenate(
            [self.wq_t * q_scale, self.wk_t, self.wv_t], axis=1).astype(bf)
        self.w_kv_bf16 = jnp.concatenate(
            [self.wk_t, self.wv_t], axis=1).astype(bf)

    def __call__(self, key, value, query, mask=None):
        if mask is not None:
            # TODO(synk): mask path (masked_fill -1e18) not implemented.
            raise NotImplementedError("mask is not supported in the Pallas path")
        B, Lk, Dm = key.shape
        Lq = query.shape[1]
        H, dph = self.head_count, self.dim_per_head
        bf = jnp.bfloat16

        # Projections: fuse QKV (or KV) so the activation is read once.
        if (query is key) and (key is value):
            qkv = pallas_linear(query.reshape(B * Lq, Dm), self.w_qkv_bf16,
                                out_dtype=bf)
            q3 = qkv[:, :Dm].reshape(B, Lq, Dm)
            k3 = qkv[:, Dm:2 * Dm].reshape(B, Lk, Dm)
            v3 = qkv[:, 2 * Dm:].reshape(B, Lk, Dm)
        elif key is value:
            q3 = pallas_linear(query.reshape(B * Lq, Dm), self.wq_bf16,
                               out_dtype=bf).reshape(B, Lq, Dm)
            kv = pallas_linear(key.reshape(B * Lk, Dm), self.w_kv_bf16,
                               out_dtype=bf)
            k3 = kv[:, :Dm].reshape(B, Lk, Dm)
            v3 = kv[:, Dm:].reshape(B, Lk, Dm)
        else:
            q3 = pallas_linear(query.reshape(B * Lq, Dm), self.wq_bf16,
                               out_dtype=bf).reshape(B, Lq, Dm)
            k3 = pallas_linear(key.reshape(B * Lk, Dm), self.wk_bf16,
                               out_dtype=bf).reshape(B, Lk, Dm)
            v3 = pallas_linear(value.reshape(B * Lk, Dm), self.wv_bf16,
                               out_dtype=bf).reshape(B, Lk, Dm)

        # Attention: heads are handled by column-blocked BlockSpecs, so no
        # shape()/unshape() HBM transposes are needed.  ctx comes back in
        # (B, Lq, model_dim) layout, lane-dense.
        ctx, attn = pallas_attention(
            q3, k3, v3, head_count=H, dim_per_head=dph,
            attn_dtype=query.dtype, ctx_dtype=bf)

        # Final linear (tiled Pallas matmul, bf16 MXU, f32 output).
        attn_output = pallas_linear(ctx.reshape(B * Lq, Dm), self.wf_bf16,
                                    out_dtype=query.dtype).reshape(B, Lq, Dm)
        return attn_output, attn


# ----------------------------------------------------------------------------
# Pure-JAX reference (mirrors the PyTorch forward, full f32).
# ----------------------------------------------------------------------------
def reference_forward(mha, key, value, query):
    B, Lk, Dm = key.shape
    Lq = query.shape[1]
    H, dph = mha.head_count, mha.dim_per_head
    k = (key.reshape(B * Lk, Dm) @ mha.wk_t).reshape(B, Lk, H, dph).transpose(0, 2, 1, 3)
    v = (value.reshape(B * Lk, Dm) @ mha.wv_t).reshape(B, Lk, H, dph).transpose(0, 2, 1, 3)
    q = (query.reshape(B * Lq, Dm) @ mha.wq_t).reshape(B, Lq, H, dph).transpose(0, 2, 1, 3)
    q = q / math.sqrt(dph)
    scores = jnp.einsum("bhqd,bhkd->bhqk", q, k)
    attn = jax.nn.softmax(scores.astype(jnp.float32), axis=-1).astype(query.dtype)
    ctx = jnp.einsum("bhqk,bhkd->bhqd", attn, v)
    context = ctx.transpose(0, 2, 1, 3).reshape(B, Lq, Dm)
    out = context.reshape(B * Lq, Dm) @ mha.wf_t
    return out.reshape(B, Lq, Dm), attn


if __name__ == "__main__":
    root = jax.random.PRNGKey(0)
    k_w, k_k, k_v, k_q, k_x = jax.random.split(root, 5)

    batch, seq_len, model_dim, heads = 2, 8, 32, 4
    mha = MultiHeadedAttentionPallas(heads, model_dim, k_w)

    # Tolerances are vs. a pure-f32 reference; the kernels use bf16 MXU inputs
    # with f32 accumulation (softmax stays f32), so a few % error is expected.
    ATOL_ATTN, ATOL_OUT = 3e-2, 6e-2

    # 1) General ("context"-style) path: distinct key / value / query tensors.
    key_in = jax.random.normal(k_k, (batch, seq_len, model_dim), jnp.float32)
    value_in = jax.random.normal(k_v, (batch, seq_len, model_dim), jnp.float32)
    query_in = jax.random.normal(k_q, (batch, seq_len, model_dim), jnp.float32)

    out, attn = mha(key_in, value_in, query_in, mask=None)
    out = jax.block_until_ready(out)
    attn = jax.block_until_ready(attn)
    assert out.shape == (batch, seq_len, model_dim)
    assert attn.shape == (batch, heads, seq_len, seq_len)

    ref_out, ref_attn = reference_forward(mha, key_in, value_in, query_in)
    assert jnp.allclose(attn, ref_attn, atol=ATOL_ATTN, rtol=ATOL_ATTN)
    assert jnp.allclose(out, ref_out, atol=ATOL_OUT, rtol=ATOL_OUT)
    # Returned attention rows must be proper distributions (exact reciprocal).
    assert jnp.allclose(jnp.sum(attn, axis=-1), 1.0, atol=1e-3)

    # 2) Self-attention path: same tensor -> fused QKV projection is exercised.
    x_in = jax.random.normal(k_x, (batch, seq_len, model_dim), jnp.float32)
    out2, attn2 = mha(x_in, x_in, x_in, mask=None)
    out2 = jax.block_until_ready(out2)
    attn2 = jax.block_until_ready(attn2)
    ref_out2, ref_attn2 = reference_forward(mha, x_in, x_in, x_in)
    assert jnp.allclose(attn2, ref_attn2, atol=ATOL_ATTN, rtol=ATOL_ATTN)
    assert jnp.allclose(out2, ref_out2, atol=ATOL_OUT, rtol=ATOL_OUT)

    print("KERNEL_OK")
</pallas_src>

<mosaic_0001>
module attributes {stable_mosaic.version = 11 : i64} {
  func.func @_linear_kernel(%arg0: i32, %arg1: i32, %arg2: i32, %arg3: memref<16x32xf32, #tpu.memory_space<vmem>>, %arg4: memref<32x32xbf16, #tpu.memory_space<vmem>>, %arg5: memref<16x32xbf16, #tpu.memory_space<vmem>>, %arg6: memref<16x32xf32, #tpu.memory_space<vmem>>) attributes {dimension_semantics = [#tpu.dimension_semantics<parallel>, #tpu.dimension_semantics<parallel>, #tpu.dimension_semantics<arbitrary>], iteration_bounds = array<i64: 1, 1, 1>, scalar_prefetch = 0 : i64, scratch_operands = 1 : i64, tpu.core_type = #tpu.core_type<tc>, window_params = [{transform_indices = @transform_0, window_bounds = array<i64: 16, 32>}, {transform_indices = @transform_1, window_bounds = array<i64: 32, 32>}, {transform_indices = @transform_2, window_bounds = array<i64: 16, 32>}]} {
    %c0_i32 = arith.constant 0 : i32
    %0 = arith.cmpi eq, %arg2, %c0_i32 : i32
    %1 = arith.extui %0 : i1 to i32
    %c0_i32_0 = arith.constant 0 : i32
    %2 = arith.cmpi ne, %1, %c0_i32_0 : i32
    scf.if %2 {
      %cst_10 = arith.constant 0.000000e+00 : f32
      %13 = vector.broadcast %cst_10 : f32 to vector<16x32xf32>
      %c0_11 = arith.constant 0 : index
      %c0_12 = arith.constant 0 : index
      %14 = vector.load %arg6[%c0_11, %c0_12] : memref<16x32xf32, #tpu.memory_space<vmem>>, vector<16x32xf32>
      tpu.vector_store %arg6[%c0_11, %c0_12], %13 {strides = array<i32>} : memref<16x32xf32, #tpu.memory_space<vmem>>, vector<16x32xf32>,
    } else {
    }
    %c0 = arith.constant 0 : index
    %c0_1 = arith.constant 0 : index
    %3 = vector.load %arg6[%c0, %c0_1] : memref<16x32xf32, #tpu.memory_space<vmem>>, vector<16x32xf32>
    %c0_2 = arith.constant 0 : index
    %c0_3 = arith.constant 0 : index
    %4 = vector.load %arg3[%c0_2, %c0_3] : memref<16x32xf32, #tpu.memory_space<vmem>>, vector<16x32xf32>
    %5 = arith.truncf %4 : vector<16x32xf32> to vector<16x32xbf16>
    %c0_4 = arith.constant 0 : index
    %c0_5 = arith.constant 0 : index
    %6 = vector.load %arg4[%c0_4, %c0_5] : memref<32x32xbf16, #tpu.memory_space<vmem>>, vector<32x32xbf16>
    %cst = arith.constant dense<0.000000e+00> : vector<16x32xf32>
    %7 = tpu.matmul %5, %6, %cst {dimension_numbers = #tpu.dot_dimension_numbers<[1], [0], [0], [1], [0, 0, 1, 1], [], []>} : vector<16x32xbf16>, vector<32x32xbf16>, vector<16x32xf32> -> vector<16x32xf32>
    %8 = arith.addf %3, %7 : vector<16x32xf32>
    %c0_6 = arith.constant 0 : index
    %c0_7 = arith.constant 0 : index
    %9 = vector.load %arg6[%c0_6, %c0_7] : memref<16x32xf32, #tpu.memory_space<vmem>>, vector<16x32xf32>
    tpu.vector_store %arg6[%c0_6, %c0_7], %8 {strides = array<i32>} : memref<16x32xf32, #tpu.memory_space<vmem>>, vector<16x32xf32>,
    %c0_i32_8 = arith.constant 0 : i32
    %10 = arith.cmpi eq, %arg2, %c0_i32_8 : i32
    %11 = arith.extui %10 : i1 to i32
    %c0_i32_9 = arith.constant 0 : i32
    %12 = arith.cmpi ne, %11, %c0_i32_9 : i32
    scf.if %12 {
      %c0_10 = arith.constant 0 : index
      %c0_11 = arith.constant 0 : index
      %13 = vector.load %arg6[%c0_10, %c0_11] : memref<16x32xf32, #tpu.memory_space<vmem>>, vector<16x32xf32>
      %14 = arith.truncf %13 : vector<16x32xf32> to vector<16x32xbf16>
      %c0_12 = arith.constant 0 : index
      %c0_13 = arith.constant 0 : index
      %15 = vector.load %arg5[%c0_12, %c0_13] : memref<16x32xbf16, #tpu.memory_space<vmem>>, vector<16x32xbf16>
      tpu.vector_store %arg5[%c0_12, %c0_13], %14 {strides = array<i32>} : memref<16x32xbf16, #tpu.memory_space<vmem>>, vector<16x32xbf16>,
    } else {
    }
    return
  }
  func.func @transform_0(%arg0: i32, %arg1: i32, %arg2: i32) -> (i32, i32) {
    %c0_i32 = arith.constant 0 : i32
    return %arg0, %arg2 : i32, i32
  }
  func.func @transform_1(%arg0: i32, %arg1: i32, %arg2: i32) -> (i32, i32) {
    %c0_i32 = arith.constant 0 : i32
    return %arg2, %arg1 : i32, i32
  }
  func.func @transform_2(%arg0: i32, %arg1: i32, %arg2: i32) -> (i32, i32) {
    %c0_i32 = arith.constant 0 : i32
    return %arg0, %arg1 : i32, i32
  }
}

</mosaic_0001>

<bundles_post_ra>
// kernel: tpu_custom_call.1
= control target key start
LH: loop header
LB: loop body
LE: loop exit
PB: predicated region body
PF: predicated region fallthrough
CT: control target
= control target key end

     0   :  { %7 = vsyncpa [#allocation4], 0  ;;  %s291_s0 = inlined_call_operand.hbm [shape: f32[16,32], index: 0, kind: input, shape index: {}]   ;;  %s292_s1 = inlined_call_operand.hbm [shape: bf16[32,32], index: 1, kind: input, shape index: {}]   ;;  %s293_s2 = inlined_call_operand.hbm [shape: bf16[16,32], index: 2, kind: output, shape index: {}]  }
   0x1   :  { %8 = vsyncpa [#allocation7], 0 }
   0x2   :  { %9 = vsyncpa [#allocation5], 0  ;;  %s247_s9 = smov [#allocation3]  }
   0x3   :  { %s15_s10 = sshll.u32 %s247_s9, 4  ;;  %s16_s10 = int_to_ptr.vmem [resolvable:$true] %s15_s10 }
   0x4   :  { %s189_s11 = scalar_lea.vmem %s16_s10, 256  ;;  %p194_p1 = scmp.lt.s32.totalorder %s16_s10, %s16_s10 }
   0x5   :  { %p190_p0 = scmp.ne.s32.totalorder %s16_s10, %s189_s11  ;;  %p195_p2 = scmp.lt.s32.totalorder %s189_s11, %s189_s11 }
   0x7   :  { %p196_p3 = por %p195_p2, %p194_p1 }
   0x9   :  { %p197_p4 = pnand %p196_p3, %p190_p0 }
   0xb   :  { %200 = shalt.err (!%p197_p4)
}
   0xc   :  { %s248_s12 = smov 128   ;;  %s249_s13 = smov 8  }
   0xd   :  { %21 = dma.hbm_to_vmem [thread:$0]  %s291_s0, 256, %s16_s10, [#allocation4], %s248_s12, %s248_s12, %s249_s13  }
   0xe   :  { %s250_s16 = smov [#allocation6]  }
   0xf   :  { %s27_s17 = sshll.u32 %s250_s16, 4  ;;  %s28_s17 = int_to_ptr.vmem [resolvable:$true] %s27_s17 }
  0x10   :  { %s209_s18 = scalar_lea.vmem %s28_s17, 256  ;;  %p214_p6 = scmp.lt.s32.totalorder %s28_s17, %s28_s17 }
  0x11   :  { %p210_p5 = scmp.ne.s32.totalorder %s28_s17, %s209_s18  ;;  %p215_p7 = scmp.lt.s32.totalorder %s209_s18, %s209_s18 }
  0x13   :  { %p216_p8 = por %p215_p7, %p214_p6 }
  0x15   :  { %p217_p9 = pnand %p216_p8, %p210_p5 }
  0x17   :  { %220 = shalt.err (!%p217_p9)
}
  0x18   :  { %s251_s19 = smov 64   ;;  %s252_s20 = smov 4  }
  0x19   :  { %33 = dma.hbm_to_vmem [thread:$0]  %s292_s1, 256, %s28_s17, [#allocation7], %s251_s19, %s251_s19, %s252_s20  }
  0x1a   :  { %241 = dma.done.wait [#allocation4], 256  }
  0x1b   :  { %242 = vsyncadd [#allocation4], 4294967040 }
  0x1c   :  { %243 = dma.done.wait [#allocation7], 256  }
  0x1d   :  { %244 = vsyncadd [#allocation7], 4294967040  ;;  %vm45_vm0 = vcmask 261120   ;;  %v253_v0 = vmov 0.0   ;;  %vm254_vm1 = vmmov 0   ;;  %v179_v1 = vld [vmem:[#allocation6 + $0x8] sm:$0xff]  }
  0x1e   :  { %162 = vmatprep.subr.bf16.mxu0 %v253_v0  ;;  %166 = vmatprep.mubr.msk.bf16.mxu0 %vm254_vm1, %v253_v0  ;;  %46 = vst.msk [vmem:[#allocation2] sm:$0xff] %vm45_vm0, %v253_v0  ;;  %47 = vst.msk [vmem:[#allocation2 + $0x8] sm:$0xff] %vm45_vm0, %v253_v0  ;;  %v180_v2 = vld [vmem:[#allocation6] sm:$0xff]   ;;  %v50_v3 = vld [vmem:[#allocation3] sm:$0xff]  ;;  %vm131_vm2 = vcmask 257024   ;;  %s255_s0 = smov [#allocation8]  }
  0x1f   :  { %163 = vmatpush3.bf16.msra.mxu0 %v179_v1  ;;  %v51_v4 = vld [vmem:[#allocation3 + $0x8] sm:$0xff]  ;;  %s139_s1 = sshll.u32 %s255_s0, 4  ;;  %s140_s1 = int_to_ptr.vmem [resolvable:$true] %s139_s1 }
  0x20   :  { %164 = vmatprep.subr.bf16.mxu0 %v253_v0  ;;  %v52_v5 = vpack.c.bf16 %v51_v4, %v50_v3  ;;  %s221_s23 = scalar_lea.vmem %s140_s1, 128  ;;  %p226_p11 = scmp.lt.s32.totalorder %s140_s1, %s140_s1 }
  0x21   :  { %p222_p10 = scmp.ne.s32.totalorder %s140_s1, %s221_s23  ;;  %p227_p12 = scmp.lt.s32.totalorder %s221_s23, %s221_s23 }
  0x23   :  { %165 = vmatpush3.bf16.msra.mxu0 %v180_v2  ;;  %p228_p13 = por %p227_p12, %p226_p11 }
  0x25   :  { %v48_v6 = vld [vmem:[#allocation2] sm:$0xff]  ;;  %v49_v10 = vld [vmem:[#allocation2 + $0x8] sm:$0xff]  ;;  %p229_p0 = pnand %p228_p13, %p222_p10 }
  0x26   :  { %167 = vmatmul.mubr.msk.bf16.vlgmr.msra.gmra.mxu0 %vm45_vm0, %v52_v5 }
  0xe6   :  { %v107_v7 = vpop.f32.mrf.mxu0 }
  0xe7   :  { %v114_v8 = vadd.f32 %v107_v7, %v48_v6 }
  0xe8   :  { %v168_v9 = vpop.f32.mrf.mxu0 }
  0xe9   :  { %116 = vst.msk [vmem:[#allocation2] sm:$0xff] %vm45_vm0, %v114_v8 }
  0xea   :  { %v110_v11 = vpop.f32.mrf.mxu0 }
  0xeb   :  { %v115_v12 = vadd.f32 %v110_v11, %v49_v10 }
  0xec   :  { %v169_v13 = vpop.f32.mrf.mxu0 }
  0xed   :  { %117 = vst.msk [vmem:[#allocation2 + $0x8] sm:$0xff] %vm45_vm0, %v115_v12 }
  0xf0   :  { %v121_v14 = vld [vmem:[#allocation2] sm:$0xff] }
  0xf1   :  { %v157_v15 = vpack.c.bf16 %v121_v14, %v121_v14 }
  0xf3   :  { %132 = vst.msk [vmem:[#allocation8] sm:$0xf] %vm131_vm2, %v157_v15 }
  0xf4   :  { %v122_v16 = vld [vmem:[#allocation2 + $0x8] sm:$0xff] }
  0xf5   :  { %v158_v17 = vpack.c.bf16 %v122_v16, %v122_v16 }
  0xf7   :  { %133 = vst.msk [vmem:[#allocation8 + $0x4] sm:$0xf] %vm131_vm2, %v158_v17 }
  0xf8   :  { %232 = shalt.err (!%p229_p0)
}
  0xf9   :  { %145 = dma.vmem_to_hbm [thread:$0]  %s140_s1, 128, %s293_s2, [#allocation5], %s251_s19, %s251_s19, %s252_s20  }
  0xfa   :  { %245 = dma.done.wait [#allocation5], 128  }
  0xfb   :  { %246 = vsyncadd [#allocation5], 4294967168 }
  0xfc   :  { %149 = vsyncpa [#allocation4], 1 }
  0xfd   :  { %150 = vsyncpa [#allocation7], 1 }
  0xfe   :  { %151 = vsyncpa [#allocation5], 1 }

</bundles_post_ra>
